<compile_context>
chip_gen: v7x
topology: tpu7x:2x2x1
jax: 0.10.0
libtpu: 0.0.40
codegen_flags: <defaults>
</compile_context>

<pallas_src>
import functools

import jax
import jax.numpy as jnp
from jax.experimental import pallas as pl
from jax.experimental.pallas import tpu as pltpu


KSIZE = 5          # nn.Conv1d(kernel_size=5, padding=2)
PAD = 2            # halo on each side


def _round_up(x, m):
    return ((x + m - 1) // m) * m


def _largest_divisor_leq(n, cap):
    cap = max(1, min(cap, n))
    for d in range(cap, 0, -1):
        if n % d == 0:
            return d
    return 1


def _vmem_capacity_bytes():
    try:
        return int(pltpu.get_tpu_info().vmem_capacity_bytes)
    except Exception:
        return 64 * 1024 * 1024        # conservative: v7x has 64 MiB VMEM per TensorCore


def _step_bytes(nb, c_in, c_out, c_in_p, lt, in_bytes, out_bytes):
    """Approximate per-grid-step VMEM footprint (double-buffered I/O + scratch)."""
    return (2 * nb * c_in * lt * in_bytes          # input tile, double-buffered
            + 2 * nb * c_out * lt * out_bytes      # output tile, double-buffered
            + nb * c_in_p * (lt + 2 * PAD) * 2     # bf16 halo window / carry scratch
            + KSIZE * c_in_p * nb * lt * 2         # bf16 im2col scratch
            + nb * c_out * lt * 4                  # f32 matmul result
            + 2 * c_out * KSIZE * c_in_p * 2       # bf16 folded weights
            + 2 * c_out * 4)                       # f32 bias


def _emit_conv(win_ref, w2_ref, bias_ref, o_ref, xcol_ref):
    """Shared tail: batched im2col in VMEM -> one MXU dot -> bias + ReLU -> store.

    win_ref:  (nb, C_in_p, LT + 2*PAD)  bf16 padded window (halos already in place)
    w2_ref:   (C_out, KSIZE*C_in_p)     bf16 weights, eval-BN scale folded in
    bias_ref: (C_out, 1)                f32 folded bias
    o_ref:    (nb, C_out, LT)           output tile
    xcol_ref: (KSIZE*C_in_p, nb*LT)     bf16 im2col scratch
    """
    nb, c_out, lt = o_ref.shape
    c_in_p = win_ref.shape[1]
    # Shifted views: static (lane-realigned) reads, aligned stores into the scratch.
    for i in range(nb):
        for kk in range(KSIZE):
            xcol_ref[kk * c_in_p:(kk + 1) * c_in_p, i * lt:(i + 1) * lt] = (
                win_ref[i, :, kk:kk + lt])
    # One deep-K matmul for all nb rows; weights load / bias broadcast happen once per step.
    acc = jnp.dot(w2_ref[...], xcol_ref[...], preferred_element_type=jnp.float32)
    y = jnp.maximum(acc + bias_ref[...], 0.0)          # folded conv-bias / eval-BN + ReLU
    # Dropout: nn.Dropout is identity in the eval-mode forward.
    # TODO(synk): training-mode dropout would need pltpu.prng_random_bits; PyTorch's RNG
    #             stream cannot be reproduced bit-exactly anyway.
    for i in range(nb):
        o_ref[i] = y[:, i * lt:(i + 1) * lt].astype(o_ref.dtype)


def _single_tile_kernel(x_ref, w2_ref, bias_ref, o_ref, win_ref, xcol_ref):
    """grid = (batch_blocks,): whole row fits one lane tile -> no carry, no lookahead step."""
    nb, c_in, length = x_ref.shape
    c_in_p = win_ref.shape[1]
    zeros_halo = jnp.zeros((nb, c_in_p, PAD), jnp.bfloat16)
    # Zeroed every step (tiny) so megacore sharding of the batch axis stays correct.
    win_ref[:, :, :PAD] = zeros_halo
    win_ref[:, :, PAD + length:] = zeros_halo
    if c_in_p > c_in:                                   # static: channel-pad rows stay zero
        win_ref[:, c_in:, :] = jnp.zeros(
            (nb, c_in_p - c_in, length + 2 * PAD), jnp.bfloat16)
    win_ref[:, :c_in, PAD:PAD + length] = x_ref[...].astype(jnp.bfloat16)
    _emit_conv(win_ref, w2_ref, bias_ref, o_ref, xcol_ref)


def _multi_tile_kernel(x_ref, w2_ref, bias_ref, o_ref, carry_ref, xcol_ref):
    """grid = (batch_blocks, num_t + 1); the L axis is sequential ("arbitrary").

    Output tile j-1 is produced at step j (one-tile lookahead supplies the right halo), so
    the output block (b, 0, 0) stays resident across j = 0..1 and is written at j == 1
    before any writeback.  This relies on same-block-index residency: do NOT change the grid
    order / the +1-step scheme without revisiting it.
    """
    j = pl.program_id(1)
    last_j = pl.num_programs(1) - 1        # == num_t
    nb, c_in, lt = x_ref.shape
    c_in_p = carry_ref.shape[1]

    @pl.when(j == 0)
    def _init():
        # Zero only what must be zero: left zero-padding of the first tile and the
        # channel-pad rows; everything else is overwritten before it is read.
        carry_ref[:, :, :PAD] = jnp.zeros((nb, c_in_p, PAD), jnp.bfloat16)
        if c_in_p > c_in:
            carry_ref[:, c_in:, :] = jnp.zeros(
                (nb, c_in_p - c_in, lt + 2 * PAD), jnp.bfloat16)

    cur = x_ref[...].astype(jnp.bfloat16)               # lookahead tile j, (nb, C_in, LT)

    @pl.when(j > 0)
    def _compute():
        # Right halo = first PAD columns of the lookahead tile; zeros at the sequence end.
        head = jnp.where(j == last_j,
                         jnp.zeros((nb, c_in, PAD), jnp.bfloat16),
                         cur[:, :, :PAD])
        carry_ref[:, :c_in, lt + PAD:] = head
        _emit_conv(carry_ref, w2_ref, bias_ref, o_ref, xcol_ref)
        # Slide: next step's left halo = last PAD columns of the current centre tile.
        carry_ref[:, :, :PAD] = carry_ref[:, :, lt:lt + PAD]

    # New centre tile.  At the extra final step (j == num_t) this stores the redundantly
    # re-fetched last tile; it is never read.
    # TODO(synk): the +1 lookahead step re-reads one input tile per batch block; a 2-column
    #             halo BlockSpec is not expressible with blocked specs, so it stays.
    carry_ref[:, :c_in, PAD:PAD + lt] = cur


@functools.partial(jax.jit, static_argnames=("normalize", "eps", "lt", "nb"))
def conv_norm_relu_drop_forward(x, weight, bias, gamma, beta,
                                running_mean, running_var,
                                normalize=True, eps=1e-5, lt=None, nb=None):
    """x: (N, C_in, L). weight: (C_out, C_in, KSIZE). Returns (N, C_out, L) in x's dtype."""
    n, c_in, length = x.shape
    c_out = weight.shape[0]
    out_dtype = x.dtype
    # bf16 activation DMA (the MXU computes in bf16 regardless); ideally the caller already
    # supplies bf16 so this convert disappears.
    if x.dtype != jnp.bfloat16:
        x = x.astype(jnp.bfloat16)
    in_bytes = 2
    out_bytes = jnp.dtype(out_dtype).itemsize
    c_in_p = _round_up(c_in, 8)

    # ---- generation-aware tiling ------------------------------------------------------
    vmem_cap = _vmem_capacity_bytes()
    step_budget = (2 * vmem_cap) // 5            # ~25 MiB on v7x, ~51 MiB on v5e/v6e

    auto_nb = nb is None or nb <= 0
    if auto_nb:
        # Keep >= 2 batch blocks so the only "parallel" axis feeds both v7x TensorCores.
        nb_ = _largest_divisor_leq(n, min(8, max(1, n // 2)))
    else:
        nb_ = _largest_divisor_leq(n, nb)        # largest divisor <= requested (no silent 1)

    if lt is None:
        if (length <= 1024
                or _step_bytes(nb_, c_in, c_out, c_in_p, length, in_bytes, out_bytes)
                <= step_budget):
            lt_ = length
        else:
            l128 = _round_up(length, 128)
            lt_ = 128
            for cand in (2048, 1024, 512, 256):
                if (l128 % cand == 0
                        and _step_bytes(nb_, c_in, c_out, c_in_p, cand,
                                        in_bytes, out_bytes) <= step_budget):
                    lt_ = cand
                    break
    else:
        lt_ = lt
        if lt_ < length and lt_ % 128 != 0:      # keep the (8,128) block rule satisfied
            lt_ = min(length, _round_up(lt_, 128))
    lt_ = min(lt_, length)
    while auto_nb and nb_ > 1 and _step_bytes(
            nb_, c_in, c_out, c_in_p, lt_, in_bytes, out_bytes) > step_budget:
        nb_ = _largest_divisor_leq(n, nb_ - 1)
    nb = nb_
    single_tile = lt_ >= length

    footprint = _step_bytes(nb, c_in, c_out, c_in_p,
                            length if single_tile else lt_, in_bytes, out_bytes)
    vmem_limit = int(min(int(vmem_cap * 0.85),
                         max(32 * 1024 * 1024, int(footprint * 1.6))))

    # ---- fold eval-mode BatchNorm + conv bias into weights / per-channel bias ----------
    w = weight.astype(jnp.float32)
    if normalize:
        scale = gamma.astype(jnp.float32) * jax.lax.rsqrt(
            running_var.astype(jnp.float32) + eps)
        eff_bias = (scale * (bias.astype(jnp.float32) - running_mean.astype(jnp.float32))
                    + beta.astype(jnp.float32))
    else:
        scale = jnp.ones((c_out,), jnp.float32)
        eff_bias = bias.astype(jnp.float32)
    w = w * scale[:, None, None]                 # BN scale folded into the conv weights
    if c_in_p != c_in:
        w = jnp.pad(w, ((0, 0), (0, c_in_p - c_in), (0, 0)))
    # W2[o, kk*C_in_p + c] = scale[o] * weight[o, c, kk]   (bf16 for the MXU; documented
    # accuracy loss vs PyTorch's f32 conv is covered by the f32 accumulation + tolerance).
    w2 = jnp.transpose(w, (0, 2, 1)).reshape(c_out, KSIZE * c_in_p).astype(jnp.bfloat16)
    eff_bias = eff_bias.reshape(c_out, 1)

    cost = pl.CostEstimate(
        flops=int(2 * KSIZE * c_in * c_out * n * length + 2 * n * c_out * length),
        transcendentals=0,
        bytes_accessed=int(n * c_in * length * in_bytes
                           + n * c_out * length * out_bytes
                           + c_out * KSIZE * c_in_p * 2),
    )

    if single_tile:
        grid_spec = pltpu.PrefetchScalarGridSpec(
            num_scalar_prefetch=0,
            grid=(n // nb,),
            in_specs=[
                pl.BlockSpec((nb, c_in, length), lambda b: (b, 0, 0)),
                pl.BlockSpec((c_out, KSIZE * c_in_p), lambda b: (0, 0)),
                pl.BlockSpec((c_out, 1), lambda b: (0, 0)),
            ],
            out_specs=pl.BlockSpec((nb, c_out, length), lambda b: (b, 0, 0)),
            scratch_shapes=[
                pltpu.VMEM((nb, c_in_p, length + 2 * PAD), jnp.bfloat16),
                pltpu.VMEM((KSIZE * c_in_p, nb * length), jnp.bfloat16),
            ],
        )
        return pl.pallas_call(
            _single_tile_kernel,
            out_shape=jax.ShapeDtypeStruct((n, c_out, length), out_dtype),
            grid_spec=grid_spec,
            compiler_params=pltpu.CompilerParams(
                dimension_semantics=("parallel",),
                vmem_limit_bytes=vmem_limit),
            cost_estimate=cost,
        )(x, w2, eff_bias)

    # ---- multi-tile path: sliding halo carry + one-tile lookahead ----------------------
    l_pad = _round_up(length, lt_)
    num_t = l_pad // lt_
    if l_pad != length:
        # Only the < LT remainder is host-padded (zeros match Conv1d padding semantics);
        # the +-2 halo itself is synthesised in VMEM.
        x = jnp.pad(x, ((0, 0), (0, 0), (0, l_pad - length)))

    grid_spec = pltpu.PrefetchScalarGridSpec(
        num_scalar_prefetch=0,
        grid=(n // nb, num_t + 1),
        in_specs=[
            pl.BlockSpec((nb, c_in, lt_),
                         lambda b, j: (b, 0, jnp.minimum(j, num_t - 1))),
            pl.BlockSpec((c_out, KSIZE * c_in_p), lambda b, j: (0, 0)),
            pl.BlockSpec((c_out, 1), lambda b, j: (0, 0)),
        ],
        out_specs=pl.BlockSpec((nb, c_out, lt_),
                               lambda b, j: (b, 0, jnp.maximum(j - 1, 0))),
        scratch_shapes=[
            pltpu.VMEM((nb, c_in_p, lt_ + 2 * PAD), jnp.bfloat16),
            pltpu.VMEM((KSIZE * c_in_p, nb * lt_), jnp.bfloat16),
        ],
    )
    out = pl.pallas_call(
        _multi_tile_kernel,
        out_shape=jax.ShapeDtypeStruct((n, c_out, l_pad), out_dtype),
        grid_spec=grid_spec,
        compiler_params=pltpu.CompilerParams(
            dimension_semantics=("parallel", "arbitrary"),
            vmem_limit_bytes=vmem_limit),
        cost_estimate=cost,
    )(x, w2, eff_bias)
    if l_pad != length:
        out = out[:, :, :length]
    return out


def _reference_forward(x, weight, bias, gamma, beta, running_mean, running_var,
                       normalize=True, eps=1e-5):
    """Pure-JAX f32 reference (eval-mode semantics)."""
    y = jax.lax.conv_general_dilated(
        x.astype(jnp.float32), weight, window_strides=(1,), padding=((PAD, PAD),),
        dimension_numbers=("NCH", "OIH", "NCH"))
    y = y + bias[None, :, None]
    if normalize:
        y = (y - running_mean[None, :, None]) / jnp.sqrt(running_var[None, :, None] + eps)
        y = y * gamma[None, :, None] + beta[None, :, None]
    return jnp.maximum(y, 0.0)


if __name__ == "__main__":
    N, C_IN, C_OUT = 2, 4, 8

    key = jax.random.PRNGKey(0)
    kx1, kx2, kx3, kw, kb, kg, kbeta, km, kv = jax.random.split(key, 9)

    fan_in = C_IN * KSIZE
    bound = 1.0 / (fan_in ** 0.5)
    weight = jax.random.uniform(kw, (C_OUT, C_IN, KSIZE), jnp.float32, -bound, bound)
    bias = jax.random.uniform(kb, (C_OUT,), jnp.float32, -bound, bound)
    gamma = 1.0 + 0.1 * jax.random.normal(kg, (C_OUT,), jnp.float32)
    beta = 0.1 * jax.random.normal(kbeta, (C_OUT,), jnp.float32)
    running_mean = 0.1 * jax.random.normal(km, (C_OUT,), jnp.float32)
    running_var = jax.random.uniform(kv, (C_OUT,), jnp.float32, 0.8, 1.2)

    def check(xin, lt=None, nb=None, normalize=True):
        out = conv_norm_relu_drop_forward(
            xin, weight, bias, gamma, beta, running_mean, running_var,
            normalize=normalize, lt=lt, nb=nb)
        out = jax.block_until_ready(out)
        ref = _reference_forward(
            xin, weight, bias, gamma, beta, running_mean, running_var,
            normalize=normalize)
        assert out.shape == ref.shape, (out.shape, ref.shape)
        out32 = out.astype(jnp.float32)
        # bf16 activations / bf16 folded weights with f32 accumulation -> loose tolerance.
        assert jnp.allclose(out32, ref, atol=5e-2, rtol=5e-2), (
            f"mismatch vs reference, max abs err = {jnp.max(jnp.abs(out32 - ref))}")

    # 1) single-tile path (block == full row), folded eval BatchNorm, auto tiling.
    x1 = jax.random.normal(kx1, (N, C_IN, 16), jnp.float32)
    check(x1, normalize=True)

    # 2) multi-tile path: L=256 -> two 128-lane tiles + one lookahead step; nb=2 batch rows
    #    per grid step exercise the batched im2col matmul and the sliding halo carry.
    x2 = jax.random.normal(kx2, (N, C_IN, 256), jnp.float32)
    check(x2, lt=128, nb=2, normalize=True)

    # 3) multi-tile with a remainder tile (L=300 -> padded to 384), normalize=False branch.
    x3 = jax.random.normal(kx3, (N, C_IN, 300), jnp.float32)
    check(x3, lt=128, normalize=False)

    # 4) normalize=False on the single-tile path.
    check(x1, normalize=False)

    print("KERNEL_OK")
</pallas_src>

<mosaic_0001>
module attributes {stable_mosaic.version = 11 : i64} {
  func.func @_single_tile_kernel(%arg0: i32, %arg1: memref<1x4x16xbf16, #tpu.memory_space<vmem>>, %arg2: memref<8x40xbf16, #tpu.memory_space<vmem>>, %arg3: memref<8x1xf32, #tpu.memory_space<vmem>>, %arg4: memref<1x8x16xf32, #tpu.memory_space<vmem>>, %arg5: memref<1x8x20xbf16, #tpu.memory_space<vmem>>, %arg6: memref<40x16xbf16, #tpu.memory_space<vmem>>) attributes {dimension_semantics = [#tpu.dimension_semantics<parallel>], iteration_bounds = array<i64: 2>, scalar_prefetch = 0 : i64, scratch_operands = 2 : i64, tpu.core_type = #tpu.core_type<tc>, window_params = [{transform_indices = @transform_0, window_bounds = array<i64: 1, 4, 16>}, {pipeline_mode = #tpu.pipeline_mode<synchronous>, transform_indices = @transform_1, window_bounds = array<i64: 8, 40>}, {pipeline_mode = #tpu.pipeline_mode<synchronous>, transform_indices = @transform_2, window_bounds = array<i64: 8, 1>}, {transform_indices = @transform_3, window_bounds = array<i64: 1, 8, 16>}]} {
    %cst = arith.constant 0.000000e+00 : bf16
    %0 = vector.broadcast %cst : bf16 to vector<1x8x2xbf16>
    %c0 = arith.constant 0 : index
    %c0_0 = arith.constant 0 : index
    %c0_1 = arith.constant 0 : index
    %1 = vector.load %arg5[%c0, %c0_0, %c0_1] : memref<1x8x20xbf16, #tpu.memory_space<vmem>>, vector<1x8x2xbf16>
    tpu.vector_store %arg5[%c0, %c0_0, %c0_1], %0 {strides = array<i32>} : memref<1x8x20xbf16, #tpu.memory_space<vmem>>, vector<1x8x2xbf16>,
    %c0_2 = arith.constant 0 : index
    %c0_3 = arith.constant 0 : index
    %c18 = arith.constant 18 : index
    %2 = vector.load %arg5[%c0_2, %c0_3, %c18] : memref<1x8x20xbf16, #tpu.memory_space<vmem>>, vector<1x8x2xbf16>
    tpu.vector_store %arg5[%c0_2, %c0_3, %c18], %0 {strides = array<i32>} : memref<1x8x20xbf16, #tpu.memory_space<vmem>>, vector<1x8x2xbf16>,
    %cst_4 = arith.constant 0.000000e+00 : bf16
    %3 = vector.broadcast %cst_4 : bf16 to vector<1x4x20xbf16>
    %c0_5 = arith.constant 0 : index
    %c4 = arith.constant 4 : index
    %c0_6 = arith.constant 0 : index
    %4 = vector.load %arg5[%c0_5, %c4, %c0_6] : memref<1x8x20xbf16, #tpu.memory_space<vmem>>, vector<1x4x20xbf16>
    tpu.vector_store %arg5[%c0_5, %c4, %c0_6], %3 {strides = array<i32>} : memref<1x8x20xbf16, #tpu.memory_space<vmem>>, vector<1x4x20xbf16>,
    %c0_7 = arith.constant 0 : index
    %c0_8 = arith.constant 0 : index
    %c0_9 = arith.constant 0 : index
    %5 = vector.load %arg1[%c0_7, %c0_8, %c0_9] : memref<1x4x16xbf16, #tpu.memory_space<vmem>>, vector<1x4x16xbf16>
    %c0_10 = arith.constant 0 : index
    %c0_11 = arith.constant 0 : index
    %c2 = arith.constant 2 : index
    %6 = vector.load %arg5[%c0_10, %c0_11, %c2] : memref<1x8x20xbf16, #tpu.memory_space<vmem>>, vector<1x4x16xbf16>
    tpu.vector_store %arg5[%c0_10, %c0_11, %c2], %5 {strides = array<i32>} : memref<1x8x20xbf16, #tpu.memory_space<vmem>>, vector<1x4x16xbf16>,
    %c0_12 = arith.constant 0 : index
    %c0_13 = arith.constant 0 : index
    %c0_14 = arith.constant 0 : index
    %7 = vector.load %arg5[%c0_12, %c0_13, %c0_14] : memref<1x8x20xbf16, #tpu.memory_space<vmem>>, vector<1x8x16xbf16>
    %8 = vector.shape_cast %7 : vector<1x8x16xbf16> to vector<8x16xbf16>
    %c0_15 = arith.constant 0 : index
    %c0_16 = arith.constant 0 : index
    %9 = vector.load %arg6[%c0_15, %c0_16] : memref<40x16xbf16, #tpu.memory_space<vmem>>, vector<8x16xbf16>
    tpu.vector_store %arg6[%c0_15, %c0_16], %8 {strides = array<i32>} : memref<40x16xbf16, #tpu.memory_space<vmem>>, vector<8x16xbf16>,
    %c0_17 = arith.constant 0 : index
    %c0_18 = arith.constant 0 : index
    %c1 = arith.constant 1 : index
    %10 = vector.load %arg5[%c0_17, %c0_18, %c1] : memref<1x8x20xbf16, #tpu.memory_space<vmem>>, vector<1x8x16xbf16>
    %11 = vector.shape_cast %10 : vector<1x8x16xbf16> to vector<8x16xbf16>
    %c8 = arith.constant 8 : index
    %c0_19 = arith.constant 0 : index
    %12 = vector.load %arg6[%c8, %c0_19] : memref<40x16xbf16, #tpu.memory_space<vmem>>, vector<8x16xbf16>
    tpu.vector_store %arg6[%c8, %c0_19], %11 {strides = array<i32>} : memref<40x16xbf16, #tpu.memory_space<vmem>>, vector<8x16xbf16>,
    %c0_20 = arith.constant 0 : index
    %c0_21 = arith.constant 0 : index
    %c2_22 = arith.constant 2 : index
    %13 = vector.load %arg5[%c0_20, %c0_21, %c2_22] : memref<1x8x20xbf16, #tpu.memory_space<vmem>>, vector<1x8x16xbf16>
    %14 = vector.shape_cast %13 : vector<1x8x16xbf16> to vector<8x16xbf16>
    %c16 = arith.constant 16 : index
    %c0_23 = arith.constant 0 : index
    %15 = vector.load %arg6[%c16, %c0_23] : memref<40x16xbf16, #tpu.memory_space<vmem>>, vector<8x16xbf16>
    tpu.vector_store %arg6[%c16, %c0_23], %14 {strides = array<i32>} : memref<40x16xbf16, #tpu.memory_space<vmem>>, vector<8x16xbf16>,
    %c0_24 = arith.constant 0 : index
    %c0_25 = arith.constant 0 : index
    %c3 = arith.constant 3 : index
    %16 = vector.load %arg5[%c0_24, %c0_25, %c3] : memref<1x8x20xbf16, #tpu.memory_space<vmem>>, vector<1x8x16xbf16>
    %17 = vector.shape_cast %16 : vector<1x8x16xbf16> to vector<8x16xbf16>
    %c24 = arith.constant 24 : index
    %c0_26 = arith.constant 0 : index
    %18 = vector.load %arg6[%c24, %c0_26] : memref<40x16xbf16, #tpu.memory_space<vmem>>, vector<8x16xbf16>
    tpu.vector_store %arg6[%c24, %c0_26], %17 {strides = array<i32>} : memref<40x16xbf16, #tpu.memory_space<vmem>>, vector<8x16xbf16>,
    %c0_27 = arith.constant 0 : index
    %c0_28 = arith.constant 0 : index
    %c4_29 = arith.constant 4 : index
    %19 = vector.load %arg5[%c0_27, %c0_28, %c4_29] : memref<1x8x20xbf16, #tpu.memory_space<vmem>>, vector<1x8x16xbf16>
    %20 = vector.shape_cast %19 : vector<1x8x16xbf16> to vector<8x16xbf16>
    %c32 = arith.constant 32 : index
    %c0_30 = arith.constant 0 : index
    %21 = vector.load %arg6[%c32, %c0_30] : memref<40x16xbf16, #tpu.memory_space<vmem>>, vector<8x16xbf16>
    tpu.vector_store %arg6[%c32, %c0_30], %20 {strides = array<i32>} : memref<40x16xbf16, #tpu.memory_space<vmem>>, vector<8x16xbf16>,
    %c0_31 = arith.constant 0 : index
    %c0_32 = arith.constant 0 : index
    %22 = vector.load %arg2[%c0_31, %c0_32] : memref<8x40xbf16, #tpu.memory_space<vmem>>, vector<8x40xbf16>
    %c0_33 = arith.constant 0 : index
    %c0_34 = arith.constant 0 : index
    %23 = vector.load %arg6[%c0_33, %c0_34] : memref<40x16xbf16, #tpu.memory_space<vmem>>, vector<40x16xbf16>
    %cst_35 = arith.constant dense<0.000000e+00> : vector<8x16xf32>
    %24 = tpu.matmul %22, %23, %cst_35 {dimension_numbers = #tpu.dot_dimension_numbers<[1], [0], [0], [1], [0, 0, 1, 1], [], []>} : vector<8x40xbf16>, vector<40x16xbf16>, vector<8x16xf32> -> vector<8x16xf32>
    %c0_36 = arith.constant 0 : index
    %c0_37 = arith.constant 0 : index
    %25 = vector.load %arg3[%c0_36, %c0_37] : memref<8x1xf32, #tpu.memory_space<vmem>>, vector<8x1xf32>
    %26 = vector.broadcast %25 : vector<8x1xf32> to vector<8x16xf32>
    %27 = arith.addf %24, %26 : vector<8x16xf32>
    %cst_38 = arith.constant 0.000000e+00 : f32
    %28 = vector.broadcast %cst_38 : f32 to vector<8x16xf32>
    %29 = arith.maximumf %27, %28 : vector<8x16xf32>
    %c0_39 = arith.constant 0 : index
    %c0_40 = arith.constant 0 : index
    %c0_41 = arith.constant 0 : index
    %30 = vector.load %arg4[%c0_39, %c0_40, %c0_41] : memref<1x8x16xf32, #tpu.memory_space<vmem>>, vector<1x8x16xf32>
    %31 = vector.shape_cast %30 : vector<1x8x16xf32> to vector<8x16xf32>
    %32 = vector.shape_cast %29 : vector<8x16xf32> to vector<1x8x16xf32>
    tpu.vector_store %arg4[%c0_39, %c0_40, %c0_41], %32 {strides = array<i32>} : memref<1x8x16xf32, #tpu.memory_space<vmem>>, vector<1x8x16xf32>,
    return
  }
  func.func @transform_0(%arg0: i32) -> (i32, i32, i32) {
    %c0_i32 = arith.constant 0 : i32
    %c0_i32_0 = arith.constant 0 : i32
    %c0_i32_1 = arith.constant 0 : i32
    return %arg0, %c0_i32, %c0_i32_0 : i32, i32, i32
  }
  func.func @transform_1(%arg0: i32) -> (i32, i32) {
    %c0_i32 = arith.constant 0 : i32
    %c0_i32_0 = arith.constant 0 : i32
    %c0_i32_1 = arith.constant 0 : i32
    return %c0_i32, %c0_i32_0 : i32, i32
  }
  func.func @transform_2(%arg0: i32) -> (i32, i32) {
    %c0_i32 = arith.constant 0 : i32
    %c0_i32_0 = arith.constant 0 : i32
    %c0_i32_1 = arith.constant 0 : i32
    return %c0_i32, %c0_i32_0 : i32, i32
  }
  func.func @transform_3(%arg0: i32) -> (i32, i32, i32) {
    %c0_i32 = arith.constant 0 : i32
    %c0_i32_0 = arith.constant 0 : i32
    %c0_i32_1 = arith.constant 0 : i32
    return %arg0, %c0_i32, %c0_i32_0 : i32, i32, i32
  }
}

</mosaic_0001>

<bundles_post_ra>
// kernel: conv_norm_relu_drop_forward.1
= control target key start
LH: loop header
LB: loop body
LE: loop exit
PB: predicated region body
PF: predicated region fallthrough
CT: control target
= control target key end

     0   :  { %8 = vsyncpa [#allocation5], 0  ;;  %s650_s0 = inlined_call_operand.vmem [shape: bf16[2,4,16], index: 0, kind: input, shape index: {}]   ;;  %s651_s1 = inlined_call_operand.vmem [shape: bf16[8,40], index: 1, kind: input, shape index: {}]   ;;  %s652_s2 = inlined_call_operand.vmem [shape: f32[8,1], index: 2, kind: input, shape index: {}]   ;;  %s653_s3 = inlined_call_operand.hbm [shape: f32[2,8,16], index: 3, kind: output, shape index: {}]  }
   0x1   :  { %10 = vsyncpa [#allocation5 + $0x1], 0  ;;  %s539_s12 = smov 0   ;;  %s541_s13 = smov 0  }
   0x2   :  { %s543_s14 = smov 0   ;;  %s545_s15 = smov 0  }
   0x3 LB: > { %s560_s16 = sadd.s32 4294967295, %s508_s15   ;;  %s365_s17 = sadd.s32 4294967294, %s508_s15   ;;  %s508_s15 = sphi %s545_s15, %s659_s15   ;;  %s504_s14 = sphi %s543_s14, %s658_s14   ;;  %s500_s13 = sphi %s541_s13, %s657_s13   ;;  %s496_s12 = sphi %s539_s12, %s656_s12  }
   0x4   : > { %s564_s18 = sadd.s32 1, %s508_s15   ;;  %s91_s19 = sadd.s32 1, %s504_s14 }
   0x5   : > { %s88_s20 = ssub.s32 %s508_s15, %s564_s18  ;;  %p101_p0 = scmp.ne.s32.totalorder %s504_s14, %s500_s13 }
   0x6   : > { %p89_p1 = scmp.eq.s32.totalorder %s88_s20, 0  ;;  %p102_p2 = scmp.eq.s32.totalorder %s560_s16, 1 }
   0x7   : > { %p107_p3 = scmp.ne.s32.totalorder %s500_s13, %s496_s12  ;;  %p108_p4 = scmp.eq.s32.totalorder %s365_s17, 1 }
   0x8   : > { %s575_s21 = scalar_select %p89_p1, %s504_s14, %s91_s19  }
   0x9   : > { %p577_p5 = por %p102_p2, %p101_p0  ;;  %p581_p6 = por %p108_p4, %p107_p3 }
   0xa   : > { %p368_p7 = scmp.ge.s32.totalorder %s508_s15, 1  ;;  %p139_p8 = scmp.lt.s32.totalorder %s508_s15, 3 }
   0xc   : > { %p140_p9 = pnand %p368_p7, %p139_p8 }
   0xd   : > { %p162_p10 = scmp.lt.s32.totalorder (!%p140_p9), %s560_s16, 1  ;;  %vm167_vm0 = vcmask (!%p140_p9), 11264   ;;  %vm169_vm1 = vcmask (!%p140_p9), 158864   ;;  %vm171_vm2 = vcmask (!%p140_p9), 158722   ;;  %v510_v0 = vmov (!%p140_p9), 0   ;;  %s511_s29 = smov (!%p140_p9), 2  }
   0xe   : > { %143 = sbr.rel (%p140_p9) target bundleno = 514 (0x202), region = 32  ;;  %168 = vst.msk [vmem:[#allocation2] sm:$0xf] (!%p140_p9), %vm167_vm0, %v510_v0  ;;  %441 = vset.pattern.permute.xlu1 (!%p140_p9), %v510_v0  ;;  %442 = vset.pattern.permute.xlu0 (!%p140_p9), %v510_v0  ;;  %vm185_vm3 = vcmask (!%p140_p9), 140304   ;;  %v512_v3 = vmov (!%p140_p9), 0.0   ;;  %vm188_vm4 = vcmask (!%p140_p9), 125952  }
   0xf   : > { %170 = vst.msk [vmem:[#allocation2] sm:$0xf] (!%p140_p9), %vm169_vm1, %v510_v0  ;;  %384 = vmatprep.subr.bf16.mxu0 (!%p140_p9), %v512_v3  ;;  %s513_s30 = smov (!%p140_p9), 126   ;;  %s514_s4 = smov (!%p140_p9), 127   ;;  %vm517_vm5 = vmmov (!%p140_p9), 0   ;;  %v220_v9 = vld [vmem:[%s652_s2] sm:$0xff] (!%p140_p9) }
  0x10   : > { %172 = vst.msk [vmem:[#allocation2] sm:$0xc] (!%p140_p9), %vm171_vm2, %v510_v0  ;;  %s515_s5 = smov (!%p140_p9), 125   ;;  %s516_s6 = smov (!%p140_p9), 124   ;;  %390 = vmatprep.mubr.msk.bf16.mxu0 (!%p140_p9), %vm517_vm5, %v512_v3  ;;  %vm245_vm6 = vcmask (!%p140_p9), 1043456   ;;  %vm241_vm7 = vcmask (!%p140_p9), 326656  }
  0x11   : > { %v214_v18 = vld [vmem:[%s651_s1] sm:$0xf] (!%p140_p9)  ;;  %s159_s11 = sand.u32 (!%p140_p9), 1, %s500_s13   ;;  %s377_s19 = sshll.u32 (!%p140_p9), %s560_s16, 7  ;;  %vm290_vm8 = vcmask (!%p140_p9), 130048  }
  0x12   : > { %s369_s17 = sshll.u32 (!%p140_p9), %s159_s11, 3  ;;  %s608_s27 = scalar_lea.hbm (!%p140_p9), %s653_s3, %s377_s19 }
  0x13   : > { %s161_s20 = scalar_lea.vmem (!%p140_p9), [#allocation4], %s369_s17 }
  0x15   : > { %s163_s24 = scalar_select %p162_p10, %s560_s16, 1 }
  0x16   : > { %s293_s16 = scalar_lea.sflag [#allocation5], %s159_s11 }
  0x17   : > { %s370_s25 = sshll.u32 %s163_s24, 1  ;;  %s306_s24 = sshll.u32 %s161_s20, 4  ;;  %s610_s24 = int_to_ptr.vmem [resolvable:$true] %s306_s24 }
  0x18   : > { %s165_s28 = scalar_lea.vmem %s650_s0, %s370_s25 }
  0x19   : > { %v371_v1 = vld.sshfl [vmem:[%s165_s28] sm:$0x3 pattern:$0x76325410]  ;;  %s446_s28 = scalar_lea.vmem %s610_s24, 128 }
  0x1a   : > { %182 = vrot.lane.b32.xlu0 %v371_v1, %s511_s29  ;;  %p447_p11 = scmp.ne.s32.totalorder %s610_s24, %s446_s28  ;;  %s518_s29 = smov [#allocation4]  }
  0x1c   : > { %p448_p12 = pnand %p447_p11, %p577_p5 }
  0x1e   : > { %p449_p13 = pneg %p448_p12 }
  0x8c   : > { %v183_v2 = vpop.permute.xlu0 %182 }
  0x8d   : > { %186 = vst.msk [vmem:[#allocation2] sm:$0x3] %vm185_vm3, %v183_v2 }
  0x94   : > { %v196_v4 = vld [vmem:[#allocation2] sm:$0xf] }
  0x95   : > { %v190_v5 = vld [vmem:[#allocation2] sm:$0xf]  ;;  %198 = vrot.lane.b32.xlu1 %v196_v4, %s513_s30  ;;  %s450_s30 = sshll.u32 %s518_s29, 4  ;;  %s451_s30 = int_to_ptr.vmem [resolvable:$false] %s450_s30 }
  0x96   : > { %192 = vrot.lane.b32.xlu0 %v190_v5, %s514_s4  ;;  %v187_v6 = vld [vmem:[#allocation2] sm:$0xf]  ;;  %s452_s4 = scalar_lea.vmem %s451_s30, 256  ;;  %p453_p0 = scmp.lt.s32.totalorder %s610_s24, %s451_s30 }
  0x97   : > { %189 = vst.msk [vmem:[#allocation3] sm:$0xf] %vm188_vm4, %v187_v6  ;;  %v202_v7 = vld [vmem:[#allocation2] sm:$0xf]  ;;  %p454_p1 = scmp.lt.s32.totalorder %s452_s4, %s446_s28 }
  0x98   : > { %v208_v8 = vld [vmem:[#allocation2] sm:$0xf] }
  0x99   : > { %204 = vrot.lane.b32.xlu1 %v202_v7, %s515_s5  ;;  %p455_p2 = por %p454_p1, %p453_p0 }
  0x9a   : > { %210 = vrot.lane.b32.xlu0 %v208_v8, %s516_s6 }
  0x9b   : > { %p456_p3 = pnand %p455_p2, %p449_p13 }
  0x9d   : > { %223 = vperm.xlu1 %441, %v220_v9  }
 0x107   : > { %v199_v10 = vpop.permute.xlu1 %198 }
 0x108   : > { %v193_v11 = vpop.permute.xlu0 %192  ;;  %201 = vst.msk [vmem:[#allocation3 + $0x8] sm:$0xf] %vm188_vm4, %v199_v10 }
 0x109   : > { %195 = vst.msk [vmem:[#allocation3 + $0x4] sm:$0xf] %vm188_vm4, %v193_v11 }
 0x10b   : > { %v205_v12 = vpop.permute.xlu1 %204 }
 0x10c   : > { %v211_v13 = vpop.permute.xlu0 %210  ;;  %207 = vst.msk [vmem:[#allocation3 + $0xc] sm:$0xf] %vm188_vm4, %v205_v12 }
 0x10d   : > { %213 = vst.msk [vmem:[#allocation3 + $0x10] sm:$0xf] %vm188_vm4, %v211_v13 }
 0x110   : > { %v443_v14 = vld [vmem:[#allocation3] sm:$0xff]  }
 0x111   : > { %385 = vmatpush3.bf16.msra.mxu0 %v443_v14 }
 0x112   : > { %386 = vmatprep.subr.bf16.mxu0 %v512_v3 }
 0x113   : > { %v444_v15 = vld [vmem:[#allocation3 + $0x8] sm:$0xff]  }
 0x114   : > { %v445_v16 = vld [vmem:[#allocation3 + $0x10] ss:$0 sps:$4 sm:$0xff]  }
 0x115   : > { %387 = vmatpush3.bf16.msra.mxu0 %v444_v15  ;;  %v247_v17 = vsel %vm245_vm6, %v445_v16, 0 }
 0x116   : > { %388 = vmatprep.subr.bf16.mxu0 %v512_v3 }
 0x119   : > { %389 = vmatpush3.bf16.msra.mxu0 %v247_v17 }
 0x11c   : > { %391 = vmatmul.mubr.msk.bf16.vlgmr.msra.gmra.mrb[0].mxu0 %vm241_vm7, %v214_v18  ;;  %v224_v19 = vpop.permute.xlu1 %223 }
 0x1ef   : > { %v283_v20 = vpop.f32.mrb[0].mxu0 }
 0x1f0   : > { %v284_v21 = vadd.f32 %v283_v20, %v224_v19  ;;  %v392_v22 = vpop.f32.mrb[1].mxu0 }
 0x1f1   : > { %v286_v23 = vpop.f32.mrb[2].mxu0 }
 0x1f2   : > { %v289_v24 = vmax.f32 %v284_v21, 0.0  ;;  %v393_v25 = vpop.f32.mrb[3].mxu0 }
 0x1f4   : > { %291 = vst.msk [vmem:[%s161_s20] sm:$0xff] %vm290_vm8, %v289_v24 }
 0x1f5   : > { %459 = shalt.err (!%p456_p3)
}
 0x1f6   : > { %s460_s5 = scalar_lea.hbm %s608_s27, 128  ;;  %s464_s8 = scalar_lea.hbm %s653_s3, 256 }
 0x1f7   : > { %p461_p4 = scmp.ne.s32.totalorder %s608_s27, %s460_s5  ;;  %p465_p9 = scmp.lt.u32.totalorder %s608_s27, %s653_s3 }
 0x1f8   : > { %p466_p10 = scmp.lt.u32.totalorder %s464_s8, %s460_s5  ;;  %p468_p12 = scmp.lt.u32.totalorder %s460_s5, %s608_s27 }
 0x1f9   : > { %p462_p7 = pnand %p461_p4, %p577_p5 }
 0x1fa   : > { %p467_p11 = por %p466_p10, %p465_p9 }
 0x1fb   : > { %p463_p8 = pneg %p462_p7 }
 0x1fc   : > { %p469_p13 = por %p468_p12, %p467_p11 }
 0x1fe   : > { %p470_p0 = pnand %p469_p13, %p463_p8 }
 0x200   : > { %473 = shalt.err (!%p470_p0)
}
 0x201   : > { %394 = dma.vmem_to_hbm [thread:$0]  (%p577_p5), %s610_s24, 128, %s608_s27, %s293_s16  }
 0x202 PF: > { %p400_p1 = scmp.ge.s32.totalorder %s508_s15, 2  ;;  %s318_s11 = sand.u32 1, %s496_s12  }
 0x203   : > { %s319_s17 = scalar_lea.sflag [#allocation5], %s318_s11 }
 0x204   : > { %p397_p2 = pnand %p400_p1, %p581_p6 }
 0x206   : > { %491 = dma.done.wait (!%p397_p2), %s319_s17, 128  }
 0x207   : > { %493 = vsyncadd (!%p397_p2), %s319_s17, 4294967168  ;;  %p13_p3 = scmp.ge.s32.totalorder %s564_s18, 4   ;;  %s656_s12 = smov %s500_s13 }
 0x208   : > { %s657_s13 = smov %s504_s14  ;;  %s658_s14 = smov %s575_s21 }
 0x209   : > { %s659_s15 = smov %s564_s18  ;;  %15 = sbr.rel (!%p13_p3) target bundleno = 3 (0x3), region = 67 }
 0x210   :  { %324 = vsyncpa [#allocation5], 1 }
 0x211   :  { %326 = vsyncpa [#allocation5 + $0x1], 1 }

</bundles_post_ra>
